<compile_context>
chip_gen: v6e
topology: v6e:2x2x1
jax: 0.10.0
libtpu: 0.0.40
codegen_flags: <defaults>
</compile_context>

<pallas_src>
import numpy as np
import jax
import jax.numpy as jnp
from jax.experimental import pallas as pl
from jax.experimental.pallas import tpu as pltpu


def _round_up(x, m):
    return ((x + m - 1) // m) * m


def weight_from_torch(w_oik):
    """Convert an nn.Conv1d weight [Cout, Cin, K] to tap-major [K, Cin, Cout]."""
    return jnp.transpose(w_oik, (2, 1, 0))


def _make_kernel(K, pad, hpad, tile_t, Cin, has_halo, has_mask, compute_dtype):
    base = hpad - pad  # window row used by tap k = 0 for output row 0

    def kernel(*refs):
        i = 0
        x_ref = refs[i]; i += 1
        halo_ref = None
        if has_halo:
            halo_ref = refs[i]; i += 1
        w_ref = refs[i]; i += 1
        b_ref = refs[i]; i += 1
        mask_ref = None
        if has_mask:
            mask_ref = refs[i]; i += 1
        o_ref = refs[i]; i += 1
        win_ref = refs[i] if pad > 0 else None

        xm = x_ref[0]                                      # (tile_t, Cin), x dtype

        if pad > 0:
            # Assemble the haloed window in a VMEM scratch (input dtype, no
            # extra full-tile cast). All stores are sublane aligned.
            win_ref[hpad:hpad + tile_t, :] = xm
            if has_halo:
                hal = halo_ref[0, 0]                       # (2*hpad, Cin)
                win_ref[0:hpad, :] = hal[0:hpad, :]
                win_ref[hpad + tile_t:, :] = hal[hpad:, :]
            else:
                z = jnp.zeros((hpad, Cin), xm.dtype)       # single tile: halo == 0
                win_ref[0:hpad, :] = z
                win_ref[hpad + tile_t:, :] = z

            acc = None
            for k in range(K):                             # K static -> unrolled
                off = base + k
                lhs = win_ref[off:off + tile_t, :].astype(compute_dtype)
                d = jnp.dot(lhs, w_ref[k], preferred_element_type=jnp.float32)
                acc = d if acc is None else acc + d
        else:
            acc = jnp.dot(xm.astype(compute_dtype), w_ref[0],
                          preferred_element_type=jnp.float32)

        acc = acc + b_ref[...]                             # (1, Cout_p) broadcast
        if has_mask:
            # exact masked_fill: masked rows become 0 even if acc is NaN/Inf
            acc = jnp.where(mask_ref[0] != 0, 0.0, acc)    # (tile_t, 1) broadcast
        o_ref[0] = acc.astype(o_ref.dtype)

    return kernel


def conv1d_block(x, weight, bias, mask=None, *, tile_t=None,
                 compute_dtype=jnp.bfloat16, out_dtype=None,
                 vmem_budget_bytes=None, vmem_limit_bytes=None):
    """Forward pass of Conv1DBlock (eval mode).

    x:      [B, T, Cin]
    weight: [K, Cin, Cout]  tap-major (use weight_from_torch for nn.Conv1d weights)
    bias:   [Cout]
    mask:   optional [B, T] bool, True => output row zeroed (masked_fill).
    Returns [B, T, Cout] in out_dtype (default: x.dtype, matching the module).
    Pass out_dtype=jnp.bfloat16 to halve output HBM traffic when acceptable.
    """
    B, T, Cin = x.shape
    K, wCin, Cout = weight.shape
    assert wCin == Cin, "weight must be tap-major [K, Cin, Cout] (see weight_from_torch)"
    assert K % 2 == 1, "Conv1DBlock uses padding=(K-1)//2; only odd K matches nn.Conv1d"
    pad = (K - 1) // 2
    hpad = _round_up(pad, 16) if pad > 0 else 0            # sublane-aligned halo rows

    out_dtype = np.dtype(x.dtype if out_dtype is None else out_dtype)
    x_bytes = x.dtype.itemsize
    o_bytes = out_dtype.itemsize
    has_mask = mask is not None

    # Lane-dense output guard: avoid masked vst.msk stores for wide Cout.
    Cout_p = _round_up(Cout, 128) if (Cout > 128 and Cout % 128 != 0) else Cout

    # ---- VMEM budget / tile size ------------------------------------------
    if vmem_budget_bytes is None or vmem_limit_bytes is None:
        try:
            info = pltpu.get_tpu_info()
            vmem_cap = int(getattr(info, "vmem_capacity_bytes", 64 << 20))
        except Exception:
            vmem_cap = 64 << 20                            # conservative (v7x per-TC)
        if vmem_budget_bytes is None:
            vmem_budget_bytes = min(24 << 20, (vmem_cap * 2) // 5)
        if vmem_limit_bytes is None:
            vmem_limit_bytes = min((vmem_cap * 3) // 4,
                                   2 * vmem_budget_bytes + (16 << 20))

    auto_tile = tile_t is None
    if auto_tile:
        per_row = (2 * Cin * x_bytes        # x tile, double buffered
                   + 2 * Cout_p * o_bytes   # out tile, double buffered
                   + Cin * x_bytes          # window scratch
                   + Cin * 2                # bf16 per-tap operand
                   + Cout_p * 4             # f32 accumulator
                   + (2 * 128 if has_mask else 0))
        tile_t = vmem_budget_bytes // max(per_row, 1)
        tile_t = max(32, min(2048, (tile_t // 32) * 32))
    tile_t = max(32, _round_up(int(tile_t), 32))
    tile_t = min(tile_t, _round_up(T, 32))
    if auto_tile:
        # Keep at least ~4 programs so both v7x TensorCores stay busy.
        min_tile = max(32, hpad)
        while B * pl.cdiv(T, tile_t) < 4:
            smaller = ((tile_t // 2) // 32) * 32
            if smaller < min_tile or smaller >= tile_t:
                break
            tile_t = smaller
    assert pad == 0 or tile_t >= hpad, f"tile_t={tile_t} must be >= halo {hpad} (K={K})"

    nT = pl.cdiv(T, tile_t)
    T_pad = nT * tile_t
    if T_pad != T:  # tail-pad with zeros (== conv zero padding); sliced off below
        x = jnp.pad(x, ((0, 0), (0, T_pad - T), (0, 0)))
        if has_mask:
            mask = jnp.pad(mask, ((0, 0), (0, T_pad - T)), constant_values=True)

    inputs = [x]
    in_specs = [pl.BlockSpec((1, tile_t, Cin), lambda b, t: (b, t, 0))]

    # Merged (left|right) halo side-array: one small DMA per step; skipped when
    # there is only one time tile (halo is all zeros -> synthesized in-kernel).
    has_halo = (pad > 0) and (nT > 1)
    if has_halo:
        zero = jnp.zeros((B, 1, hpad, Cin), x.dtype)
        xr = x.reshape(B, nT, tile_t, Cin)
        lh = jnp.concatenate([zero, xr[:, :-1, tile_t - hpad:, :]], axis=1)
        rh = jnp.concatenate([xr[:, 1:, :hpad, :], zero], axis=1)
        halo = jnp.concatenate([lh, rh], axis=2)           # (B, nT, 2*hpad, Cin)
        inputs.append(halo)
        in_specs.append(pl.BlockSpec((1, 1, 2 * hpad, Cin),
                                     lambda b, t: (b, t, 0, 0)))

    wq = weight.astype(compute_dtype)                      # [K, Cin, Cout] bf16
    bq = bias.astype(jnp.float32).reshape(1, Cout)
    if Cout_p != Cout:
        wq = jnp.pad(wq, ((0, 0), (0, 0), (0, Cout_p - Cout)))
        bq = jnp.pad(bq, ((0, 0), (0, Cout_p - Cout)))
    inputs += [wq, bq]
    in_specs += [pl.BlockSpec((K, Cin, Cout_p), lambda b, t: (0, 0, 0)),
                 pl.BlockSpec((1, Cout_p), lambda b, t: (0, 0))]

    if has_mask:
        mask_i8 = mask.astype(jnp.int8)[..., None]         # (B, T_pad, 1), 1 => zero row
        inputs.append(mask_i8)
        in_specs.append(pl.BlockSpec((1, tile_t, 1), lambda b, t: (b, t, 0)))

    scratch = []
    if pad > 0:
        scratch.append(pltpu.VMEM((tile_t + 2 * hpad, Cin), x.dtype))

    kernel = _make_kernel(K, pad, hpad, tile_t, Cin, has_halo, has_mask, compute_dtype)

    bytes_accessed = (B * T_pad * Cin * x_bytes
                      + wq.size * wq.dtype.itemsize
                      + B * T_pad * Cout_p * o_bytes
                      + (B * T_pad if has_mask else 0))
    cost = pl.CostEstimate(flops=2 * B * T_pad * K * Cin * Cout_p,
                           transcendentals=0,
                           bytes_accessed=bytes_accessed)

    out = pl.pallas_call(
        kernel,
        out_shape=jax.ShapeDtypeStruct((B, T_pad, Cout_p), out_dtype),
        grid_spec=pltpu.PrefetchScalarGridSpec(
            num_scalar_prefetch=0,
            grid=(B, nT),
            in_specs=in_specs,
            out_specs=pl.BlockSpec((1, tile_t, Cout_p), lambda b, t: (b, t, 0)),
            scratch_shapes=scratch,
        ),
        compiler_params=pltpu.CompilerParams(
            dimension_semantics=("parallel", "parallel"),
            vmem_limit_bytes=int(vmem_limit_bytes)),
        cost_estimate=cost,
    )(*inputs)

    if T_pad != T or Cout_p != Cout:
        out = out[:, :T, :Cout]
    return out


def _reference(x, weight, bias, mask=None, compute_dtype=jnp.bfloat16,
               out_dtype=None):
    """Pure-JAX reference mirroring nn.Conv1d semantics (channels-last),
    with the same bf16 operand rounding as the kernel."""
    K = weight.shape[0]
    pad = (K - 1) // 2
    out_dtype = x.dtype if out_dtype is None else out_dtype
    xc = x.astype(compute_dtype).astype(jnp.float32)
    wc = weight.astype(compute_dtype).astype(jnp.float32)
    xp = jnp.pad(xc, ((0, 0), (pad, pad), (0, 0)))
    T = x.shape[1]
    out = bias.astype(jnp.float32)[None, None, :]
    for k in range(K):
        out = out + jnp.einsum("bti,io->bto", xp[:, k:k + T, :], wc[k])
    if mask is not None:
        out = jnp.where(mask[..., None], 0.0, out)
    return out.astype(out_dtype)


if __name__ == "__main__":
    key = jax.random.PRNGKey(0)
    # Small but representative: kernel_size=5 (pad=2), T not a tile multiple
    # (exercises tail padding), several time tiles (exercises the halo path).
    B, T, Cin, Cout, K = 2, 80, 128, 128, 5

    kx, kw, kb, km = jax.random.split(key, 4)
    x = jax.random.normal(kx, (B, T, Cin), dtype=jnp.float32)
    w_torch = jax.random.normal(kw, (Cout, Cin, K), dtype=jnp.float32) * 0.05  # nn.Conv1d layout
    weight = weight_from_torch(w_torch)                                        # [K, Cin, Cout]
    bias = jax.random.normal(kb, (Cout,), dtype=jnp.float32) * 0.1
    mask = jax.random.bernoulli(km, 0.25, (B, T))   # True => masked_fill with 0

    # 1) f32 in/out, mask, explicit small tile (3 time tiles -> halo path).
    out = jax.block_until_ready(conv1d_block(x, weight, bias, mask, tile_t=32))
    ref = _reference(x, weight, bias, mask)
    assert out.shape == (B, T, Cout) and out.dtype == x.dtype
    assert jnp.allclose(out, ref, atol=1e-2, rtol=1e-2), \
        f"mismatch vs reference (max abs err {jnp.max(jnp.abs(out - ref))})"

    # 2) bf16 in/out (reduced HBM bytes), no mask, auto tile_t from VMEM budget.
    xb = x.astype(jnp.bfloat16)
    out2 = jax.block_until_ready(conv1d_block(xb, weight, bias, None))
    ref2 = _reference(xb, weight, bias, None)
    assert out2.shape == (B, T, Cout) and out2.dtype == jnp.bfloat16
    assert jnp.allclose(out2.astype(jnp.float32), ref2.astype(jnp.float32),
                        atol=5e-2, rtol=5e-2), "mismatch (bf16 I/O path)"

    # 3) kernel_size=1 (pad == 0) fast path, with mask.
    w1 = weight[2:3]
    out3 = jax.block_until_ready(conv1d_block(x, w1, bias, mask, tile_t=64))
    ref3 = _reference(x, w1, bias, mask)
    assert jnp.allclose(out3, ref3, atol=1e-2, rtol=1e-2), "mismatch (K=1 path)"

    print("KERNEL_OK")
</pallas_src>

<mosaic_0001>
module attributes {stable_mosaic.version = 11 : i64} {
  func.func @kernel(%arg0: i32, %arg1: i32, %arg2: memref<1x32x128xf32, #tpu.memory_space<vmem>>, %arg3: memref<1x1x32x128xf32, #tpu.memory_space<vmem>>, %arg4: memref<5x128x128xbf16, #tpu.memory_space<vmem>>, %arg5: memref<1x128xf32, #tpu.memory_space<vmem>>, %arg6: memref<1x32x1xi8, #tpu.memory_space<vmem>>, %arg7: memref<1x32x128xf32, #tpu.memory_space<vmem>>, %arg8: memref<64x128xf32, #tpu.memory_space<vmem>>) attributes {dimension_semantics = [#tpu.dimension_semantics<parallel>, #tpu.dimension_semantics<parallel>], iteration_bounds = array<i64: 2, 3>, scalar_prefetch = 0 : i64, scratch_operands = 1 : i64, tpu.core_type = #tpu.core_type<tc>, window_params = [{transform_indices = @transform_0, window_bounds = array<i64: 1, 32, 128>}, {transform_indices = @transform_1, window_bounds = array<i64: 1, 1, 32, 128>}, {pipeline_mode = #tpu.pipeline_mode<synchronous>, transform_indices = @transform_2, window_bounds = array<i64: 5, 128, 128>}, {pipeline_mode = #tpu.pipeline_mode<synchronous>, transform_indices = @transform_3, window_bounds = array<i64: 1, 128>}, {transform_indices = @transform_4, window_bounds = array<i64: 1, 32, 1>}, {transform_indices = @transform_5, window_bounds = array<i64: 1, 32, 128>}]} {
    %c0 = arith.constant 0 : index
    %c0_0 = arith.constant 0 : index
    %c0_1 = arith.constant 0 : index
    %0 = vector.load %arg2[%c0, %c0_0, %c0_1] : memref<1x32x128xf32, #tpu.memory_space<vmem>>, vector<1x32x128xf32>
    %1 = vector.shape_cast %0 : vector<1x32x128xf32> to vector<32x128xf32>
    %c16 = arith.constant 16 : index
    %c0_2 = arith.constant 0 : index
    %2 = vector.load %arg8[%c16, %c0_2] : memref<64x128xf32, #tpu.memory_space<vmem>>, vector<32x128xf32>
    tpu.vector_store %arg8[%c16, %c0_2], %1 {strides = array<i32>} : memref<64x128xf32, #tpu.memory_space<vmem>>, vector<32x128xf32>,
    %c0_3 = arith.constant 0 : index
    %c0_4 = arith.constant 0 : index
    %c0_5 = arith.constant 0 : index
    %c0_6 = arith.constant 0 : index
    %3 = vector.load %arg3[%c0_3, %c0_4, %c0_5, %c0_6] : memref<1x1x32x128xf32, #tpu.memory_space<vmem>>, vector<1x1x32x128xf32>
    %4 = vector.shape_cast %3 : vector<1x1x32x128xf32> to vector<32x128xf32>
    %5 = vector.extract_strided_slice %4 {offsets = [0, 0], sizes = [16, 128], strides = [1, 1]} : vector<32x128xf32> to vector<16x128xf32>
    %c0_7 = arith.constant 0 : index
    %c0_8 = arith.constant 0 : index
    %6 = vector.load %arg8[%c0_7, %c0_8] : memref<64x128xf32, #tpu.memory_space<vmem>>, vector<16x128xf32>
    tpu.vector_store %arg8[%c0_7, %c0_8], %5 {strides = array<i32>} : memref<64x128xf32, #tpu.memory_space<vmem>>, vector<16x128xf32>,
    %7 = vector.extract_strided_slice %4 {offsets = [16, 0], sizes = [16, 128], strides = [1, 1]} : vector<32x128xf32> to vector<16x128xf32>
    %c48 = arith.constant 48 : index
    %c0_9 = arith.constant 0 : index
    %8 = vector.load %arg8[%c48, %c0_9] : memref<64x128xf32, #tpu.memory_space<vmem>>, vector<16x128xf32>
    tpu.vector_store %arg8[%c48, %c0_9], %7 {strides = array<i32>} : memref<64x128xf32, #tpu.memory_space<vmem>>, vector<16x128xf32>,
    %c14 = arith.constant 14 : index
    %c0_10 = arith.constant 0 : index
    %9 = vector.load %arg8[%c14, %c0_10] : memref<64x128xf32, #tpu.memory_space<vmem>>, vector<32x128xf32>
    %10 = arith.truncf %9 : vector<32x128xf32> to vector<32x128xbf16>
    %c0_11 = arith.constant 0 : index
    %c0_12 = arith.constant 0 : index
    %c0_13 = arith.constant 0 : index
    %11 = vector.load %arg4[%c0_11, %c0_12, %c0_13] : memref<5x128x128xbf16, #tpu.memory_space<vmem>>, vector<1x128x128xbf16>
    %12 = vector.shape_cast %11 : vector<1x128x128xbf16> to vector<128x128xbf16>
    %cst = arith.constant dense<0.000000e+00> : vector<32x128xf32>
    %13 = tpu.matmul %10, %12, %cst {dimension_numbers = #tpu.dot_dimension_numbers<[1], [0], [0], [1], [0, 0, 1, 1], [], []>} : vector<32x128xbf16>, vector<128x128xbf16>, vector<32x128xf32> -> vector<32x128xf32>
    %c15 = arith.constant 15 : index
    %c0_14 = arith.constant 0 : index
    %14 = vector.load %arg8[%c15, %c0_14] : memref<64x128xf32, #tpu.memory_space<vmem>>, vector<32x128xf32>
    %15 = arith.truncf %14 : vector<32x128xf32> to vector<32x128xbf16>
    %c1 = arith.constant 1 : index
    %c0_15 = arith.constant 0 : index
    %c0_16 = arith.constant 0 : index
    %16 = vector.load %arg4[%c1, %c0_15, %c0_16] : memref<5x128x128xbf16, #tpu.memory_space<vmem>>, vector<1x128x128xbf16>
    %17 = vector.shape_cast %16 : vector<1x128x128xbf16> to vector<128x128xbf16>
    %cst_17 = arith.constant dense<0.000000e+00> : vector<32x128xf32>
    %18 = tpu.matmul %15, %17, %cst_17 {dimension_numbers = #tpu.dot_dimension_numbers<[1], [0], [0], [1], [0, 0, 1, 1], [], []>} : vector<32x128xbf16>, vector<128x128xbf16>, vector<32x128xf32> -> vector<32x128xf32>
    %19 = arith.addf %13, %18 : vector<32x128xf32>
    %c16_18 = arith.constant 16 : index
    %c0_19 = arith.constant 0 : index
    %20 = vector.load %arg8[%c16_18, %c0_19] : memref<64x128xf32, #tpu.memory_space<vmem>>, vector<32x128xf32>
    %21 = arith.truncf %20 : vector<32x128xf32> to vector<32x128xbf16>
    %c2 = arith.constant 2 : index
    %c0_20 = arith.constant 0 : index
    %c0_21 = arith.constant 0 : index
    %22 = vector.load %arg4[%c2, %c0_20, %c0_21] : memref<5x128x128xbf16, #tpu.memory_space<vmem>>, vector<1x128x128xbf16>
    %23 = vector.shape_cast %22 : vector<1x128x128xbf16> to vector<128x128xbf16>
    %cst_22 = arith.constant dense<0.000000e+00> : vector<32x128xf32>
    %24 = tpu.matmul %21, %23, %cst_22 {dimension_numbers = #tpu.dot_dimension_numbers<[1], [0], [0], [1], [0, 0, 1, 1], [], []>} : vector<32x128xbf16>, vector<128x128xbf16>, vector<32x128xf32> -> vector<32x128xf32>
    %25 = arith.addf %19, %24 : vector<32x128xf32>
    %c17 = arith.constant 17 : index
    %c0_23 = arith.constant 0 : index
    %26 = vector.load %arg8[%c17, %c0_23] : memref<64x128xf32, #tpu.memory_space<vmem>>, vector<32x128xf32>
    %27 = arith.truncf %26 : vector<32x128xf32> to vector<32x128xbf16>
    %c3 = arith.constant 3 : index
    %c0_24 = arith.constant 0 : index
    %c0_25 = arith.constant 0 : index
    %28 = vector.load %arg4[%c3, %c0_24, %c0_25] : memref<5x128x128xbf16, #tpu.memory_space<vmem>>, vector<1x128x128xbf16>
    %29 = vector.shape_cast %28 : vector<1x128x128xbf16> to vector<128x128xbf16>
    %cst_26 = arith.constant dense<0.000000e+00> : vector<32x128xf32>
    %30 = tpu.matmul %27, %29, %cst_26 {dimension_numbers = #tpu.dot_dimension_numbers<[1], [0], [0], [1], [0, 0, 1, 1], [], []>} : vector<32x128xbf16>, vector<128x128xbf16>, vector<32x128xf32> -> vector<32x128xf32>
    %31 = arith.addf %25, %30 : vector<32x128xf32>
    %c18 = arith.constant 18 : index
    %c0_27 = arith.constant 0 : index
    %32 = vector.load %arg8[%c18, %c0_27] : memref<64x128xf32, #tpu.memory_space<vmem>>, vector<32x128xf32>
    %33 = arith.truncf %32 : vector<32x128xf32> to vector<32x128xbf16>
    %c4 = arith.constant 4 : index
    %c0_28 = arith.constant 0 : index
    %c0_29 = arith.constant 0 : index
    %34 = vector.load %arg4[%c4, %c0_28, %c0_29] : memref<5x128x128xbf16, #tpu.memory_space<vmem>>, vector<1x128x128xbf16>
    %35 = vector.shape_cast %34 : vector<1x128x128xbf16> to vector<128x128xbf16>
    %cst_30 = arith.constant dense<0.000000e+00> : vector<32x128xf32>
    %36 = tpu.matmul %33, %35, %cst_30 {dimension_numbers = #tpu.dot_dimension_numbers<[1], [0], [0], [1], [0, 0, 1, 1], [], []>} : vector<32x128xbf16>, vector<128x128xbf16>, vector<32x128xf32> -> vector<32x128xf32>
    %37 = arith.addf %31, %36 : vector<32x128xf32>
    %c0_31 = arith.constant 0 : index
    %c0_32 = arith.constant 0 : index
    %38 = vector.load %arg5[%c0_31, %c0_32] : memref<1x128xf32, #tpu.memory_space<vmem>>, vector<1x128xf32>
    %39 = vector.broadcast %38 : vector<1x128xf32> to vector<32x128xf32>
    %40 = arith.addf %37, %39 : vector<32x128xf32>
    %c0_33 = arith.constant 0 : index
    %c0_34 = arith.constant 0 : index
    %c0_35 = arith.constant 0 : index
    %41 = vector.load %arg6[%c0_33, %c0_34, %c0_35] : memref<1x32x1xi8, #tpu.memory_space<vmem>>, vector<1x32x1xi8>
    %42 = vector.shape_cast %41 : vector<1x32x1xi8> to vector<32x1xi8>
    %c0_i8 = arith.constant 0 : i8
    %43 = vector.broadcast %c0_i8 : i8 to vector<32x1xi8>
    %44 = arith.cmpi ne, %42, %43 : vector<32x1xi8>
    %cst_36 = arith.constant 0.000000e+00 : f32
    %45 = vector.shape_cast %44 : vector<32x1xi1> to vector<32x1xi1>
    %46 = vector.broadcast %45 : vector<32x1xi1> to vector<32x128xi1>
    %47 = vector.broadcast %cst_36 : f32 to vector<32x128xf32>
    %48 = arith.select %46, %47, %40 : vector<32x128xi1>, vector<32x128xf32>
    %c0_37 = arith.constant 0 : index
    %c0_38 = arith.constant 0 : index
    %c0_39 = arith.constant 0 : index
    %49 = vector.load %arg7[%c0_37, %c0_38, %c0_39] : memref<1x32x128xf32, #tpu.memory_space<vmem>>, vector<1x32x128xf32>
    %50 = vector.shape_cast %49 : vector<1x32x128xf32> to vector<32x128xf32>
    %51 = vector.shape_cast %48 : vector<32x128xf32> to vector<1x32x128xf32>
    tpu.vector_store %arg7[%c0_37, %c0_38, %c0_39], %51 {strides = array<i32>} : memref<1x32x128xf32, #tpu.memory_space<vmem>>, vector<1x32x128xf32>,
    return
  }
  func.func @transform_0(%arg0: i32, %arg1: i32) -> (i32, i32, i32) {
    %c0_i32 = arith.constant 0 : i32
    %c0_i32_0 = arith.constant 0 : i32
    return %arg0, %arg1, %c0_i32 : i32, i32, i32
  }
  func.func @transform_1(%arg0: i32, %arg1: i32) -> (i32, i32, i32, i32) {
    %c0_i32 = arith.constant 0 : i32
    %c0_i32_0 = arith.constant 0 : i32
    %c0_i32_1 = arith.constant 0 : i32
    return %arg0, %arg1, %c0_i32, %c0_i32_0 : i32, i32, i32, i32
  }
  func.func @transform_2(%arg0: i32, %arg1: i32) -> (i32, i32, i32) {
    %c0_i32 = arith.constant 0 : i32
    %c0_i32_0 = arith.constant 0 : i32
    %c0_i32_1 = arith.constant 0 : i32
    %c0_i32_2 = arith.constant 0 : i32
    return %c0_i32, %c0_i32_0, %c0_i32_1 : i32, i32, i32
  }
  func.func @transform_3(%arg0: i32, %arg1: i32) -> (i32, i32) {
    %c0_i32 = arith.constant 0 : i32
    %c0_i32_0 = arith.constant 0 : i32
    %c0_i32_1 = arith.constant 0 : i32
    return %c0_i32, %c0_i32_0 : i32, i32
  }
  func.func @transform_4(%arg0: i32, %arg1: i32) -> (i32, i32, i32) {
    %c0_i32 = arith.constant 0 : i32
    %c0_i32_0 = arith.constant 0 : i32
    return %arg0, %arg1, %c0_i32 : i32, i32, i32
  }
  func.func @transform_5(%arg0: i32, %arg1: i32) -> (i32, i32, i32) {
    %c0_i32 = arith.constant 0 : i32
    %c0_i32_0 = arith.constant 0 : i32
    return %arg0, %arg1, %c0_i32 : i32, i32, i32
  }
}

</mosaic_0001>

<bundles_post_ra>
// kernel: tpu_custom_call.1
= control target key start
LH: loop header
LB: loop body
LE: loop exit
PB: predicated region body
PF: predicated region fallthrough
CT: control target
= control target key end

     0   :  { %s2063_s0 = inlined_call_operand.hbm [shape: f32[2,96,128], index: 0, kind: input, shape index: {}]   ;;  %s2064_s1 = inlined_call_operand.hbm [shape: f32[2,3,32,128], index: 1, kind: input, shape index: {}]   ;;  %s2065_s2 = inlined_call_operand.hbm [shape: bf16[5,128,128], index: 2, kind: input, shape index: {}]   ;;  %s2066_s3 = inlined_call_operand.vmem [shape: f32[1,128], index: 3, kind: input, shape index: {}]   ;;  %s2067_s4 = inlined_call_operand.vmem [shape: s8[2,96,1], index: 4, kind: input, shape index: {}]   ;;  %s2068_s5 = inlined_call_operand.hbm [shape: f32[2,96,128], index: 5, kind: output, shape index: {}]  }
   0x1   :  { %2076 = sst [smem:[#allocation21_spill]] %s2063_s0 }
   0x2   :  { %2077 = sst [smem:[#allocation22_spill]] %s2065_s2 }
   0x3   :  { %2078 = sst [smem:[#allocation23_spill]] %s2068_s5 }
   0x4   :  { %10 = vsyncpa [#allocation4], 0 }
   0x5   :  { %12 = vsyncpa [#allocation4 + $0x1], 0 }
   0x6   :  { %13 = vsyncpa [#allocation7], 0 }
   0x7   :  { %15 = vsyncpa [#allocation7 + $0x1], 0 }
   0x8   :  { %16 = vsyncpa [#allocation5], 0 }
   0x9   :  { %18 = vsyncpa [#allocation5 + $0x1], 0  ;;  %s1795_s18 = smov 0   ;;  %s1797_s19 = smov 0  }
   0xa   :  { %s1799_s20 = smov 0   ;;  %s1801_s21 = smov 0  }
   0xb   :  { %s1803_s22 = smov 0   ;;  %s1805_s23 = smov 0  }
   0xc   :  { %s1807_s24 = smov 0   ;;  %s1809_s25 = smov 0  }
   0xd LB: > { %2079 = sst [smem:[#allocation14_spill]] %s1724_s18  ;;  %s1836_s26 = sadd.s32 4294967295, %s1752_s25   ;;  %s1752_s25 = sphi %s1809_s25, %s24_s25   ;;  %s1748_s24 = sphi %s1807_s24, %s2104_s24   ;;  %s1744_s23 = sphi %s1805_s23, %s2103_s23   ;;  %s1740_s22 = sphi %s1803_s22, %s2102_s22   ;;  %s1736_s21 = sphi %s1801_s21, %s2101_s21   ;;  %s1732_s20 = sphi %s1799_s20, %s2107_s20   ;;  %s1728_s19 = sphi %s1797_s19, %s2106_s19   ;;  %s1724_s18 = sphi %s1795_s18, %s2105_s18  }
   0xe   : > { %2080 = sst [smem:[#allocation15_spill]] %s1744_s23  ;;  %s1206_s27 = sadd.s32 4294967294, %s1752_s25  }
   0xf   : > { %2081 = sst [smem:[#allocation16_spill]] %s1748_s24  ;;  %p58_p0 = scmp.ne.s32.totalorder %s1728_s19, %s1724_s18 }
  0x10   : > { %p59_p1 = scmp.eq.s32.totalorder %s1836_s26, 0  ;;  %p188_p3 = scmp.eq.s32.totalorder %s1206_s27, 5 }
  0x11   : > { %p1207_p5 = scmp.ge.s32.totalorder %s1752_s25, 1  ;;  %p195_p7 = scmp.lt.s32.totalorder %s1752_s25, 7 }
  0x12   : > { %p1845_p4 = por %p59_p1, %p58_p0  ;;  %p1850_p6 = por %p188_p3, %p58_p0 }
  0x13   : > { %p1855_p8 = pnand %p1207_p5, %p195_p7  ;;  %s1754_s6 = smov [#allocation8]  }
  0x14   : > { %s2083_s29 = scalar_select %p1850_p6, 1, 0 }
  0x15   : > { %s207_s7 = sshll.u32 %s1754_s6, 4  ;;  %p1433_p9 = pneg %p1855_p8  ;;  %s208_s7 = int_to_ptr.vmem [resolvable:$true] %s207_s7 }
  0x16   : > { %2084 = sst [smem:[#allocation17_spill]] %s2083_s29  ;;  %s1577_s8 = scalar_lea.vmem %s208_s7, 5120 }
  0x17   : > { %p1434_p10 = pnand %p1433_p9, %p59_p1  ;;  %p1578_p12 = scmp.ne.s32.totalorder %s208_s7, %s1577_s8 }
  0x18   : > { %p1585_p3 = scmp.lt.s32.totalorder %s208_s7, %s208_s7  ;;  %p1586_p2 = scmp.lt.s32.totalorder %s1577_s8, %s1577_s8 }
  0x19   : > { %p1568_p11 = pneg %p1434_p10 }
  0x1a   : > { %p1587_p6 = por %p1586_p2, %p1585_p3 }
  0x1b   : > { %p1580_p13 = pnand %p1578_p12, %p1568_p11 }
  0x1d   : > { %p1581_p0 = pneg %p1580_p13 }
  0x1f   : > { %p1588_p5 = pnand %p1587_p6, %p1581_p0 }
  0x21   : > { %1591 = shalt.err (!%p1588_p5)
}
  0x22   : > { %s1755_s9 = smov 64   ;;  %s1756_s10 = smov 4  }
  0x23   : > { %s2086_s2 = sld [smem:[#allocation22_spill]]  ;;  %s33_s13 = sadd.s32 1, %s1744_s23 }
  0x24   : > { %p34_p2 = scmp.ge.s32.totalorder %s33_s13, 3  ;;  %s36_s14 = sadd.s32 1, %s1748_s24 }
  0x25   : > { %s45_s15 = sadd.s32 1, %s1732_s20  ;;  %p52_p6 = scmp.ne.s32.totalorder %s1732_s20, %s1728_s19 }
  0x26   : > { %s2109_s13 = smov (%p34_p2, %s33_s13), 0  ;;  %s2111_s14 = smov (!%p34_p2, %s36_s14), %s1748_s24 }
  0x27   : > { %2087 = sst [smem:[#allocation18_spill]] %s2109_s13  ;;  %s41_s16 = ssub.s32 %s1744_s23, %s2109_s13 }
  0x28   : > { %p53_p7 = scmp.eq.s32.totalorder %s1752_s25, 0  ;;  %p38_p9 = scmp.ge.s32.totalorder %s2111_s14, 2 }
  0x29   : > { %1436 = dma.hbm_to_vmem [thread:$0]  (!%p1434_p10), %s2086_s2, 5120, %s208_s7, [#allocation7], %s1755_s9, %s1755_s9, %s1756_s10  }
  0x2a   : > { %p2088_p11 = scmp.eq.s32.totalorder %s1836_s26, 5  ;;  %p1883_p10 = por %p53_p7, %p52_p6 }
  0x2b   : > { %p1449_p13 = scmp.lt.s32.totalorder %s1752_s25, 6  ;;  %s2113_s14 = smov (%p38_p9, %s2111_s14), 0 }
  0x2c   : > { %p1879_p12 = por %p2088_p11, %p52_p6  ;;  %2091 = sst [smem:[#allocation19_spill]] %s2113_s14 }
  0x2d   : > { %s224_s6 = sand.u32 1, %s1732_s20   ;;  %s1211_s7 = sshll.u32 %s1744_s23, 2 }
  0x2e   : > { %s40_s8 = ssub.s32 %s1748_s24, %s2113_s14  ;;  %s1894_s10 = sshll.u32 %s224_s6, 5 }
  0x2f   : > { %s42_s9 = sor.u32 %s41_s16, %s40_s8  ;;  %s1419_s11 = smul.u32 12, %s1748_s24 }
  0x30   : > { %p43_p0 = scmp.eq.s32.totalorder %s42_s9, 0  ;;  %s228_s12 = scalar_lea.vmem [#allocation3], %s1894_s10 }
  0x31   : > { %s237_s2 = sshll.u32 %s228_s12, 4  ;;  %s234_s29 = sadd.s32 %s1419_s11, %s1211_s7  ;;  %s238_s2 = int_to_ptr.vmem [resolvable:$true] %s237_s2 }
  0x32   : > { %s1899_s13 = scalar_select %p43_p0, %s1732_s20, %s45_s15  }
  0x33   : > { %s1212_s18 = sshll.u32 %s234_s29, 7  ;;  %p1905_p3 = pnand %p1449_p13, %p1883_p10 }
  0x34   : > { %2092 = sst [smem:[#allocation20_spill]] %s1899_s13  ;;  %s225_s9 = scalar_lea.sflag [#allocation4], %s224_s6 }
  0x35   : > { %s2094_s0 = sld [smem:[#allocation21_spill]]  ;;  %p1594_p5 = pneg %p1905_p3 }
  0x36   : > { %s1605_s15 = scalar_lea.vmem %s238_s2, 512  ;;  %s1757_s29 = smov [#allocation3]  }
  0x37   : > { %p1606_p2 = scmp.ne.s32.totalorder %s238_s2, %s1605_s15  ;;  %s1610_s27 = sshll.u32 %s1757_s29, 4  ;;  %s1611_s27 = int_to_ptr.vmem [resolvable:$false] %s1610_s27 }
  0x38   : > { %s1612_s7 = scalar_lea.vmem %s1611_s27, 1024  ;;  %p1613_p9 = scmp.lt.s32.totalorder %s238_s2, %s1611_s27 }
  0x39   : > { %p1608_p6 = pnand %p1606_p2, %p1594_p5  ;;  %p1614_p11 = scmp.lt.s32.totalorder %s1612_s7, %s1605_s15 }
  0x3b   : > { %s236_s8 = scalar_lea.hbm %s2094_s0, %s1212_s18  ;;  %p1609_p7 = pneg %p1608_p6 }
  0x3c   : > { %p1615_p10 = por %p1614_p11, %p1613_p9 }
  0x3e   : > { %p1616_p13 = pnand %p1615_p10, %p1609_p7 }
  0x40   : > { %1619 = shalt.err (!%p1616_p13)
}
  0x41   : > { %s1758_s14 = smov 128   ;;  %s1759_s6 = smov 8  }
  0x42   : > { %1440 = dma.hbm_to_vmem [thread:$0]  (!%p1905_p3), %s236_s8, 512, %s238_s2, %s225_s9, %s1758_s14, %s1758_s14, %s1759_s6  }
  0x43   : > { %s259_s16 = scalar_lea.hbm %s2064_s1, %s1212_s18  ;;  %s251_s29 = scalar_lea.vmem [#allocation6], %s1894_s10 }
  0x44   : > { %s260_s0 = sshll.u32 %s251_s29, 4  ;;  %s247_s24 = sand.u32 1, %s1752_s25   ;;  %s261_s0 = int_to_ptr.vmem [resolvable:$true] %s260_s0 }
  0x45   : > { %s248_s15 = scalar_lea.sflag [#allocation7], %s247_s24  ;;  %s1633_s27 = scalar_lea.vmem %s261_s0, 512 }
  0x46   : > { %p1634_p0 = scmp.ne.s32.totalorder %s261_s0, %s1633_s27  ;;  %s1760_s7 = smov [#allocation6]  }
  0x47   : > { %s1638_s23 = sshll.u32 %s1760_s7, 4  ;;  %s1639_s23 = int_to_ptr.vmem [resolvable:$false] %s1638_s23 }
  0x48   : > { %p1636_p2 = pnand %p1634_p0, %p1594_p5  ;;  %s1640_s13 = scalar_lea.vmem %s1639_s23, 1024 }
  0x49   : > { %p1641_p7 = scmp.lt.s32.totalorder %s261_s0, %s1639_s23  ;;  %p1642_p9 = scmp.lt.s32.totalorder %s1640_s13, %s1633_s27 }
  0x4a   : > { %p1637_p6 = pneg %p1636_p2 }
  0x4b   : > { %p1643_p11 = por %p1642_p9, %p1641_p7 }
  0x4d   : > { %p1644_p10 = pnand %p1643_p11, %p1637_p6 }
  0x4f   : > { %1647 = shalt.err (!%p1644_p10)
}
  0x50   : > { %1443 = dma.hbm_to_vmem [thread:$0]  (!%p1905_p3), %s259_s16, 512, %s261_s0, %s248_s15, %s1758_s14, %s1758_s14, %s1759_s6  }
  0x51   : > { %285 = sbr.rel (%p1855_p8) target bundleno = 408 (0x198), region = 40  ;;  %s1932_s2 = sand.u32 (!%p1855_p8), 1, %s1728_s19  }
  0x52   : > { %s1935_s18 = sshll.u32 (!%p1855_p8), %s1932_s2, 5  ;;  %s288_s23 = scalar_lea.sflag (!%p1855_p8), [#allocation4], %s1932_s2 }
  0x53   : > { %s1939_s24 = scalar_lea.vmem (!%p1855_p8), [#allocation3], %s1935_s18 }
  0x56   : > { %1707 = dma.done.wait (%p1845_p4), %s288_s23, 512  }
  0x57   : > { %1709 = vsyncadd (%p1845_p4), %s288_s23, 4294966784  ;;  %s296_s0 = sand.u32 1, %s1836_s26   ;;  %s300_s30 = scalar_lea.vmem [#allocation6], %s1935_s18 }
  0x58   : > { %s297_s5 = scalar_lea.sflag [#allocation7], %s296_s0 }
  0x59   : > { %1711 = dma.done.wait (%p1845_p4), %s297_s5, 512  }
  0x5a   : > { %1713 = vsyncadd (%p1845_p4), %s297_s5, 4294966784 }
  0x5b   : > { %1715 = dma.done.wait (%p59_p1), [#allocation7], 5120  }
  0x5c   : > { %1717 = vsyncadd (%p59_p1), [#allocation7], 4294962176  ;;  %v1761_v0 = vmov 0   ;;  %v1526_v1 = vld [vmem:[#allocation8 + $0x78] sm:$0xff]   ;;  %v1528_v3 = vld [vmem:[#allocation8 + $0x70] sm:$0xff]   ;;  %s1976_s26 = sshll.u32 %s1736_s21, 2 }
  0x5d   : > { %1525 = vset.pattern.permute.xlu1 %v1761_v0  ;;  %1524 = vset.pattern.permute.xlu0 %v1761_v0  ;;  %v1527_v2 = vld [vmem:[#allocation8 + $0x38] sm:$0xff]   ;;  %v1529_v4 = vld [vmem:[#allocation8 + $0x30] sm:$0xff]   ;;  %v1530_v5 = vld [vmem:[#allocation8 + $0x68] sm:$0xff]   ;;  %p347_p1 = scmp.lt.s32.totalorder %s1740_s22, 1  ;;  %p349_p4 = scmp.lt.s32.totalorder %s1976_s26, 11 }
  0x5e   : > { %1319 = vmatprep.subr.bf16.mxu0 %v1526_v1  ;;  %1339 = vmatprep.subr.bf16.mxu1 %v1527_v2  ;;  %v1531_v6 = vld [vmem:[#allocation8 + $0x28] sm:$0xff]   ;;  %v1532_v7 = vld [vmem:[#allocation8 + $0x60] sm:$0xff]   ;;  %v1534_v9 = vld [vmem:[#allocation8 + $0x58] sm:$0xff]   ;;  %s1422_s11 = smul.u32 12, %s1740_s22  ;;  %s344_s15 = scalar_lea.vmem [#allocation9], %s1935_s18 }
  0x5f   : > { %1320 = vmatpush3.bf16.msra.mxu0 %v1526_v1  ;;  %1340 = vmatpush3.bf16.msra.mxu1 %v1527_v2  ;;  %v1533_v8 = vld [vmem:[#allocation8 + $0x20] sm:$0xff]   ;;  %v1535_v10 = vld [vmem:[#allocation8 + $0x18] sm:$0xff]   ;;  %v1536_v11 = vld [vmem:[#allocation8 + $0x50] sm:$0xff]   ;;  %s348_s28 = scalar_select %p347_p1, %s1740_s22, 1 }
  0x60   : > { %1321 = vmatprep.subr.bf16.mxu0 %v1528_v3  ;;  %1341 = vmatprep.subr.bf16.mxu1 %v1529_v4  ;;  %v1537_v12 = vld [vmem:[#allocation8 + $0x10] sm:$0xff]   ;;  %v1958_v13 = vld [vmem:[%s1939_s24] sm:$0xff]  ;;  %v1961_v14 = vld [vmem:[%s1939_s24 + $0x8] sm:$0xff]  ;;  %s350_s21 = scalar_select %p349_p4, %s1976_s26, 11 }
  0x61   : > { %364 = vst [vmem:[#allocation2 + $0x10] sm:$0xff] %v1958_v13  ;;  %v369_v15 = vld [vmem:[%s300_s30 + $0x8] sm:$0xff]  ;;  %v1967_v16 = vld [vmem:[%s1939_s24 + $0x10] sm:$0xff]  ;;  %365 = vst [vmem:[#allocation2 + $0x18] sm:$0xff] %v1961_v14  ;;  %v619_v38 = vpack.c.bf16 %v1961_v14, %v1958_v13  ;;  %s1421_s13 = smul.u32 12, %s348_s28  ;;  %s1059_s29 = sadd.s32 %s1422_s11, %s1976_s26 }
  0x62   : > { %373 = vst [vmem:[#allocation2 + $0x8] sm:$0xff] %v369_v15  ;;  %v1971_v17 = vld [vmem:[%s1939_s24 + $0x18] sm:$0xff]  ;;  %366 = vst [vmem:[#allocation2 + $0x20] sm:$0xff] %v1967_v16  ;;  %v1538_v18 = vld [vmem:[#allocation8 + $0x48] sm:$0xff]   ;;  %s1266_s22 = sshll.u32 %s1059_s29, 7  ;;  %s1062_s27 = sshll.u32 %s344_s15, 4  ;;  %s2010_s27 = int_to_ptr.vmem [resolvable:$true] %s1062_s27 }
  0x63   : > { %1322 = vmatpush3.bf16.msra.mxu0 %v1528_v3  ;;  %1342 = vmatpush3.bf16.msra.mxu1 %v1529_v4  ;;  %367 = vst [vmem:[#allocation2 + $0x28] sm:$0xff] %v1971_v17  ;;  %v1539_v19 = vld [vmem:[#allocation8 + $0x8] sm:$0xff]   ;;  %v1540_v20 = vld [vmem:[#allocation8 + $0x40] sm:$0xff]   ;;  %v1542_v30 = vld [vmem:[#allocation8 + $0xb8] sm:$0xff]   ;;  %s352_s10 = sadd.s32 %s1421_s13, %s350_s21  ;;  %v620_v13 = vpack.c.bf16 %v1971_v17, %v1967_v16  ;;  %s2095_s24 = sld [smem:[#allocation23_spill]] }
  0x64   : > { %1323 = vmatprep.subr.bf16.mxu0 %v1530_v5  ;;  %1343 = vmatprep.subr.bf16.mxu1 %v1531_v6  ;;  %v1541_v24 = vld [vmem:[#allocation8] sm:$0xff]   ;;  %v1543_v33 = vld [vmem:[#allocation8 + $0xf8] sm:$0xff]   ;;  %v1544_v36 = vld [vmem:[#allocation8 + $0xb0] sm:$0xff]   ;;  %s1222_s8 = sshll.u32 %s352_s10, 1  ;;  %s1047_s18 = scalar_lea.sflag [#allocation5], %s1932_s2 }
  0x65   : > { %v1545_v37 = vld [vmem:[#allocation8 + $0xf0] sm:$0xff]   ;;  %v1546_v39 = vld [vmem:[#allocation8 + $0xa8] sm:$0xff]   ;;  %v1548_v45 = vld [vmem:[#allocation8 + $0xa0] sm:$0xff]   ;;  %s354_s6 = scalar_lea.vmem %s2067_s4, %s1222_s8  ;;  %s1762_s26 = smov [#allocation9]  }
  0x66   : > { %v1547_v40 = vld [vmem:[#allocation8 + $0xe8] sm:$0xff]   ;;  %v370_v43 = vld [vmem:[%s300_s30 + $0x10] sm:$0xff]  ;;  %v1549_v46 = vld [vmem:[#allocation8 + $0xe0] sm:$0xff]   ;;  %s1648_s30 = scalar_lea.vmem %s2010_s27, 512  ;;  %s1652_s28 = sshll.u32 %s1762_s26, 4  ;;  %s1653_s28 = int_to_ptr.vmem [resolvable:$false] %s1652_s28 }
  0x67   : > { %1324 = vmatpush3.bf16.msra.mxu0 %v1530_v5  ;;  %1344 = vmatpush3.bf16.msra.mxu1 %v1531_v6  ;;  %374 = vst [vmem:[#allocation2 + $0x30] sm:$0xff] %v370_v43  ;;  %v1550_v47 = vld [vmem:[#allocation8 + $0x98] sm:$0xff]   ;;  %v1000_v49 = vld [vmem:[%s354_s6 + $0x4] sm:$0x3]  ;;  %v998_v50 = vld [vmem:[%s354_s6] sm:$0x3]  ;;  %p1649_p8 = scmp.ne.s32.totalorder %s2010_s27, %s1648_s30  ;;  %p1655_p13 = scmp.lt.s32.totalorder %s2010_s27, %s1653_s28 }
  0x68   : > { %1325 = vmatprep.subr.bf16.mxu0 %v1532_v7  ;;  %1345 = vmatprep.subr.bf16.mxu1 %v1533_v8  ;;  %v399_v22 = vld [vmem:[#allocation2 + $0x17] sm:$0xff]  ;;  %v1001_v51 = vld [vmem:[%s354_s6 + $0x6] sm:$0x3]  ;;  %vm1004_vm0 = vnez %v1000_v49  ;;  %vm1002_vm1 = vnez %v998_v50  ;;  %v999_v54 = vld [vmem:[%s354_s6 + $0x2] sm:$0x3]  ;;  %s1654_s21 = scalar_lea.vmem %s1653_s28, 1024 }
  0x69   : > { %v398_v21 = vld [vmem:[#allocation2 + $0xf] sm:$0xff]  ;;  %v400_v28 = vld [vmem:[#allocation2 + $0x1f] sm:$0xff]  ;;  %vm1005_vm2 = vnez %v1001_v51  ;;  %v1008_v55 = vsel %vm1004_vm0, 16843009, %v1761_v0  ;;  %v1006_v56 = vsel %vm1002_vm1, 16843009, %v1761_v0  ;;  %vm1003_vm3 = vnez %v999_v54  ;;  %s2096_s0 = smov %s2095_s24  ;;  %s2008_s5 = scalar_lea.hbm %s2095_s24, %s1266_s22 }
  0x6a   : > { %v376_v23 = vld [vmem:[#allocation2 + $0xe] sm:$0xff]  ;;  %v402_v25 = vpack.c.bf16 %v399_v22, %v398_v21  ;;  %v377_v26 = vld [vmem:[#allocation2 + $0x16] sm:$0xff]  ;;  %v378_v31 = vld [vmem:[#allocation2 + $0x1e] sm:$0xff]  ;;  %v1009_v57 = vsel %vm1005_vm2, 16843009, %v1761_v0  ;;  %v1012_v58 = vunpack.c.0.s8 %v1008_v55  ;;  %v1010_v59 = vunpack.c.0.s8 %v1006_v56  ;;  %p1650_p3 = pnand %p1649_p8, %p1879_p12  ;;  %p1656_p0 = scmp.lt.s32.totalorder %s1654_s21, %s1648_s30 }
  0x6b   : > { %1326 = vmatpush3.bf16.msra.mxu0 %v1532_v7  ;;  %1346 = vmatpush3.bf16.msra.mxu1 %v1533_v8  ;;  %v380_v27 = vpack.c.bf16 %v377_v26, %v376_v23  ;;  %v401_v29 = vld [vmem:[#allocation2 + $0x27] sm:$0xff]  ;;  %v739_v41 = vld [vmem:[#allocation2 + $0x11] sm:$0xff]  ;;  %v740_v42 = vld [vmem:[#allocation2 + $0x19] sm:$0xff]  ;;  %v1013_v60 = vunpack.c.0.s8 %v1009_v57  ;;  %v1007_v61 = vsel %vm1003_vm3, 16843009, %v1761_v0 }
  0x6c   : > { %1327 = vmatprep.subr.bf16.mxu0 %v1534_v9  ;;  %1347 = vmatprep.subr.bf16.mxu1 %v1535_v10  ;;  %v379_v32 = vld [vmem:[#allocation2 + $0x26] sm:$0xff]  ;;  %v403_v34 = vpack.c.bf16 %v401_v29, %v400_v28  ;;  %v743_v44 = vpack.c.bf16 %v740_v42, %v739_v41  ;;  %v1551_v48 = vld [vmem:[#allocation8 + $0xd8] sm:$0xff]   ;;  %v1552_v52 = vld [vmem:[#allocation8 + $0x90] sm:$0xff]   ;;  %v1011_v62 = vunpack.c.0.s8 %v1007_v61  ;;  %vm1016_vm4 = vcmp.ne.s32.totalorder %v1012_v58, 0  ;;  %p1651_p5 = pneg %p1650_p3  ;;  %p1657_p2 = por %p1656_p0, %p1655_p13 }
  0x6d   : > { %1335 = vmatprep.mubr.bf16.mxu0 %v402_v25  ;;  %1355 = vmatprep.mubr.bf16.mxu1 %v380_v27  ;;  %v381_v35 = vpack.c.bf16 %v379_v32, %v378_v31  ;;  %v1553_v53 = vld [vmem:[#allocation8 + $0xd0] sm:$0xff]   ;;  %v1554_v63 = vld [vmem:[#allocation8 + $0x88] sm:$0xff]   ;;  %vm1014_vm5 = vcmp.ne.s32.totalorder %v1010_v59, 0  ;;  %vm1017_vm6 = vcmp.ne.s32.totalorder %v1013_v60, 0  ;;  %v1020_v2 = vsel %vm1016_vm4, 1, %v1761_v0  ;;  %v1556_v6 = vld [vmem:[#allocation8 + $0x80] sm:$0xff]  }
  0x6e   : > { %v1555_v1 = vld [vmem:[#allocation8 + $0xc8] sm:$0xff]   ;;  %v1018_v3 = vsel %vm1014_vm5, 1, %v1761_v0  ;;  %vm1015_vm7 = vcmp.ne.s32.totalorder %v1011_v62, 0  ;;  %1029 = vperm.xlu1 %1525, %v1020_v2   ;;  %v1021_v4 = vsel %vm1017_vm6, 1, %v1761_v0  ;;  %v1557_v7 = vld [vmem:[#allocation8 + $0xc0] sm:$0xff]   ;;  %v1558_v8 = vld [vmem:[#allocation8 + $0x138] sm:$0xff]   ;;  %p1658_p6 = pnand %p1657_p2, %p1651_p5 }
  0x6f   : > { %1328 = vmatpush3.bf16.msra.mxu0 %v1534_v9  ;;  %1348 = vmatpush3.bf16.msra.mxu1 %v1535_v10  ;;  %v1019_v5 = vsel %vm1015_vm7, 1, %v1761_v0  ;;  %v741_v9 = vld [vmem:[#allocation2 + $0x21] sm:$0xff]  ;;  %v742_v10 = vld [vmem:[#allocation2 + $0x29] sm:$0xff]  ;;  %v1263_v50 = vld [vmem:[%s2066_s3] ss:$0 sm:$0xff] }
  0x70   : > { %1329 = vmatprep.subr.bf16.mxu0 %v1536_v11  ;;  %1349 = vmatprep.subr.bf16.mxu1 %v1537_v12  ;;  %v744_v0 = vpack.c.bf16 %v742_v10, %v741_v9  ;;  %v1559_v14 = vld [vmem:[#allocation8 + $0x130] sm:$0xff]   ;;  %v1564_v17 = vld [vmem:[#allocation8 + $0x108] sm:$0xff]   ;;  %v1565_v21 = vld [vmem:[#allocation8 + $0x100] sm:$0xff]  }
  0x71   : > { %1023 = vperm.xlu0 %1524, %v1018_v3   ;;  %v1563_v16 = vld [vmem:[#allocation8 + $0x110] sm:$0xff]   ;;  %v865_v22 = vld [vmem:[#allocation2 + $0x22] sm:$0xff] }
  0x72   : > { %1032 = vperm.xlu1 %1525, %v1021_v4   ;;  %v866_v23 = vld [vmem:[#allocation2 + $0x2a] sm:$0xff] }
  0x73   : > { %1330 = vmatpush3.bf16.msra.mxu0 %v1536_v11  ;;  %1350 = vmatpush3.bf16.msra.mxu1 %v1537_v12  ;;  %v863_v11 = vld [vmem:[#allocation2 + $0x12] sm:$0xff]  ;;  %v864_v12 = vld [vmem:[#allocation2 + $0x1a] sm:$0xff] }
  0x74   : > { %1331 = vmatprep.subr.bf16.mxu0 %v1538_v18  ;;  %1351 = vmatprep.subr.bf16.mxu1 %v1539_v19  ;;  %v867_v15 = vpack.c.bf16 %v864_v12, %v863_v11 }
  0x75   : > { %1026 = vperm.xlu0 %1524, %v1019_v5  }
  0x77   : > { %1332 = vmatpush3.bf16.msra.mxu0 %v1538_v18  ;;  %1352 = vmatpush3.bf16.msra.mxu1 %v1539_v19  ;;  %v1560_v18 = vld [vmem:[#allocation8 + $0x128] sm:$0xff]   ;;  %v1561_v19 = vld [vmem:[#allocation8 + $0x120] sm:$0xff]  }
  0x78   : > { %1333 = vmatprep.subr.bf16.mxu0 %v1540_v20  ;;  %1353 = vmatprep.subr.bf16.mxu1 %v1541_v24 }
  0x7b   : > { %1334 = vmatpush3.bf16.msra.mxu0 %v1540_v20  ;;  %1354 = vmatpush3.bf16.msra.mxu1 %v1541_v24  ;;  %v1562_v20 = vld [vmem:[#allocation8 + $0x118] sm:$0xff]   ;;  %v868_v24 = vpack.c.bf16 %v866_v23, %v865_v22 }
  0x7c   : > { %1359 = vmatprep.subr.bf16.mxu0 %v1542_v30  ;;  %1379 = vmatprep.subr.bf16.mxu1 %v1543_v33 }
  0x7e   : > { %1336 = vmatmul.mubr.bf16.vlgmr.msra.gmra.mxu0 %v403_v34  ;;  %1356 = vmatmul.mubr.bf16.vlgmr.msra.gmra.mxu1 %v381_v35 }
  0x7f   : > { %1360 = vmatpush3.bf16.msra.mxu0 %v1542_v30  ;;  %1380 = vmatpush3.bf16.msra.mxu1 %v1543_v33 }
  0x80   : > { %1361 = vmatprep.subr.bf16.mxu0 %v1544_v36  ;;  %1381 = vmatprep.subr.bf16.mxu1 %v1545_v37 }
  0x81   : > { %1375 = vmatprep.mubr.bf16.mxu0 %v619_v38  ;;  %1395 = vmatprep.mubr.bf16.mxu1 %v743_v44 }
  0x83   : > { %1362 = vmatpush3.bf16.msra.mxu0 %v1544_v36  ;;  %1382 = vmatpush3.bf16.msra.mxu1 %v1545_v37 }
  0x84   : > { %1363 = vmatprep.subr.bf16.mxu0 %v1546_v39  ;;  %1383 = vmatprep.subr.bf16.mxu1 %v1547_v40 }
  0x87   : > { %1364 = vmatpush3.bf16.msra.mxu0 %v1546_v39  ;;  %1384 = vmatpush3.bf16.msra.mxu1 %v1547_v40 }
  0x88   : > { %1365 = vmatprep.subr.bf16.mxu0 %v1548_v45  ;;  %1385 = vmatprep.subr.bf16.mxu1 %v1549_v46 }
  0x8b   : > { %1366 = vmatpush3.bf16.msra.mxu0 %v1548_v45  ;;  %1386 = vmatpush3.bf16.msra.mxu1 %v1549_v46 }
  0x8c   : > { %1367 = vmatprep.subr.bf16.mxu0 %v1550_v47  ;;  %1387 = vmatprep.subr.bf16.mxu1 %v1551_v48 }
  0x8f   : > { %1368 = vmatpush3.bf16.msra.mxu0 %v1550_v47  ;;  %1388 = vmatpush3.bf16.msra.mxu1 %v1551_v48 }
  0x90   : > { %1369 = vmatprep.subr.bf16.mxu0 %v1552_v52  ;;  %1389 = vmatprep.subr.bf16.mxu1 %v1553_v53 }
  0x93   : > { %1370 = vmatpush3.bf16.msra.mxu0 %v1552_v52  ;;  %1390 = vmatpush3.bf16.msra.mxu1 %v1553_v53 }
  0x94   : > { %1371 = vmatprep.subr.bf16.mxu0 %v1554_v63  ;;  %1391 = vmatprep.subr.bf16.mxu1 %v1555_v1 }
  0x97   : > { %1372 = vmatpush3.bf16.msra.mxu0 %v1554_v63  ;;  %1392 = vmatpush3.bf16.msra.mxu1 %v1555_v1 }
  0x98   : > { %1373 = vmatprep.subr.bf16.mxu0 %v1556_v6  ;;  %1393 = vmatprep.subr.bf16.mxu1 %v1557_v7 }
  0x9b   : > { %1374 = vmatpush3.bf16.msra.mxu0 %v1556_v6  ;;  %1394 = vmatpush3.bf16.msra.mxu1 %v1557_v7 }
  0x9c   : > { %1399 = vmatprep.subr.bf16.mxu0 %v1558_v8 }
  0x9e   : > { %1376 = vmatmul.mubr.bf16.vlgmr.msra.gmra.mxu0 %v620_v13  ;;  %1396 = vmatmul.mubr.bf16.vlgmr.msra.gmra.mxu1 %v744_v0 }
  0x9f   : > { %1400 = vmatpush3.bf16.msra.mxu0 %v1558_v8  ;;  %1415 = vmatprep.mubr.bf16.mxu0 %v867_v15 }
  0xa0   : > { %1401 = vmatprep.subr.bf16.mxu0 %v1559_v14 }
  0xa3   : > { %1402 = vmatpush3.bf16.msra.mxu0 %v1559_v14 }
  0xa4   : > { %1403 = vmatprep.subr.bf16.mxu0 %v1560_v18 }
  0xa7   : > { %1404 = vmatpush3.bf16.msra.mxu0 %v1560_v18 }
  0xa8   : > { %1405 = vmatprep.subr.bf16.mxu0 %v1561_v19 }
  0xab   : > { %1406 = vmatpush3.bf16.msra.mxu0 %v1561_v19 }
  0xac   : > { %1407 = vmatprep.subr.bf16.mxu0 %v1562_v20 }
  0xaf   : > { %1408 = vmatpush3.bf16.msra.mxu0 %v1562_v20 }
  0xb0   : > { %1409 = vmatprep.subr.bf16.mxu0 %v1563_v16 }
  0xb3   : > { %1410 = vmatpush3.bf16.msra.mxu0 %v1563_v16 }
  0xb4   : > { %1411 = vmatprep.subr.bf16.mxu0 %v1564_v17 }
  0xb7   : > { %1412 = vmatpush3.bf16.msra.mxu0 %v1564_v17 }
  0xb8   : > { %1413 = vmatprep.subr.bf16.mxu0 %v1565_v21 }
  0xbb   : > { %1414 = vmatpush3.bf16.msra.mxu0 %v1565_v21 }
  0xbe   : > { %1416 = vmatmul.mubr.bf16.vlgmr.msra.gmra.mxu0 %v868_v24 }
  0xe9   : > { %v1030_v48 = vpop.permute.xlu1 %1029 }
  0xea   : > { %vm1036_vm8 = vcmp.eq.s32.totalorder %v1030_v48, 1 }
  0xec   : > { %v1024_v54 = vpop.permute.xlu0 %1023 }
  0xed   : > { %vm1034_vm9 = vcmp.eq.s32.totalorder %v1024_v54, 1  ;;  %v1033_v2 = vpop.permute.xlu1 %1032 }
  0xee   : > { %vm1037_vm10 = vcmp.eq.s32.totalorder %v1033_v2, 1 }
  0xf0   : > { %v1027_v6 = vpop.permute.xlu0 %1026 }
  0xf1   : > { %vm1035_vm11 = vcmp.eq.s32.totalorder %v1027_v6, 1 }
 0x13e   : > { %v1337_v25 = vpop.f32.mrf.mxu0  ;;  %v1357_v26 = vpop.f32.mrf.mxu1 }
 0x13f   : > { %v609_v36 = vadd.f32 %v1357_v26, %v1337_v25 }
 0x140   : > { %v503_v27 = vpop.f32.mrf.mxu0  ;;  %v600_v28 = vpop.f32.mrf.mxu1 }
 0x141   : > { %v601_v39 = vadd.f32 %v600_v28, %v503_v27 }
 0x142   : > { %v1338_v29 = vpop.f32.mrf.mxu0  ;;  %v1358_v30 = vpop.f32.mrf.mxu1 }
 0x143   : > { %v612_v41 = vadd.f32 %v1358_v30, %v1338_v29 }
 0x144   : > { %v506_v31 = vpop.f32.mrf.mxu0  ;;  %v603_v33 = vpop.f32.mrf.mxu1 }
 0x145   : > { %v604_v45 = vadd.f32 %v603_v33, %v506_v31 }
 0x15e   : > { %v1377_v32 = vpop.f32.mrf.mxu0  ;;  %v1397_v35 = vpop.f32.mrf.mxu1 }
 0x15f   : > { %v737_v40 = vadd.f32 %v1377_v32, %v609_v36 }
 0x160   : > { %v720_v34 = vpop.f32.mrf.mxu0  ;;  %v844_v38 = vpop.f32.mrf.mxu1 }
 0x161   : > { %v735_v42 = vadd.f32 %v720_v34, %v601_v39  ;;  %v861_v46 = vadd.f32 %v1397_v35, %v737_v40 }
 0x162   : > { %v1378_v37 = vpop.f32.mrf.mxu0  ;;  %v1398_v44 = vpop.f32.mrf.mxu1 }
 0x163   : > { %v738_v47 = vadd.f32 %v1378_v37, %v612_v41  ;;  %v859_v51 = vadd.f32 %v844_v38, %v735_v42 }
 0x164   : > { %v723_v43 = vpop.f32.mrf.mxu0  ;;  %v847_v55 = vpop.f32.mrf.mxu1 }
 0x165   : > { %v736_v52 = vadd.f32 %v723_v43, %v604_v45  ;;  %v862_v57 = vadd.f32 %v1398_v44, %v738_v47 }
 0x167   : > { %v860_v61 = vadd.f32 %v847_v55, %v736_v52 }
 0x17e   : > { %v1417_v49 = vpop.f32.mrf.mxu0 }
 0x17f   : > { %v985_v53 = vadd.f32 %v1417_v49, %v861_v46 }
 0x180   : > { %v968_v56 = vpop.f32.mrf.mxu0 }
 0x181   : > { %v996_v58 = vadd.f32 %v1263_v50, %v985_v53  ;;  %v983_v59 = vadd.f32 %v968_v56, %v859_v51 }
 0x182   : > { %v1418_v60 = vpop.f32.mrf.mxu0 }
 0x183   : > { %v1040_v62 = vsel %vm1036_vm8, 0.0, %v996_v58  ;;  %v994_v63 = vadd.f32 %v1263_v50, %v983_v59  ;;  %v986_v1 = vadd.f32 %v1418_v60, %v862_v57 }
 0x184   : > { %1044 = vst [vmem:[%s344_s15 + $0x10] sm:$0xff] %v1040_v62  ;;  %v971_v3 = vpop.f32.mrf.mxu0 }
 0x185   : > { %v1038_v4 = vsel %vm1034_vm9, 0.0, %v994_v63  ;;  %v997_v5 = vadd.f32 %v1263_v50, %v986_v1  ;;  %v984_v7 = vadd.f32 %v971_v3, %v860_v61 }
 0x186   : > { %1042 = vst [vmem:[%s344_s15] sm:$0xff] %v1038_v4 }
 0x187   : > { %v1041_v8 = vsel %vm1037_vm10, 0.0, %v997_v5  ;;  %v995_v9 = vadd.f32 %v1263_v50, %v984_v7 }
 0x188   : > { %1045 = vst [vmem:[%s344_s15 + $0x18] sm:$0xff] %v1041_v8 }
 0x189   : > { %v1039_v10 = vsel %vm1035_vm11, 0.0, %v995_v9 }
 0x18a   : > { %1043 = vst [vmem:[%s344_s15 + $0x8] sm:$0xff] %v1039_v10 }
 0x18b   : > { %1661 = shalt.err (!%p1658_p6)
}
 0x18c   : > { %s1662_s13 = scalar_lea.hbm %s2008_s5, 512  ;;  %s1666_s9 = scalar_lea.hbm %s2096_s0, 3072 }
 0x18d   : > { %p1663_p7 = scmp.ne.s32.totalorder %s2008_s5, %s1662_s13  ;;  %p1667_p10 = scmp.lt.s32.totalorder %s2008_s5, %s2096_s0 }
 0x18e   : > { %p1668_p1 = scmp.lt.s32.totalorder %s1666_s9, %s1662_s13 }
 0x18f   : > { %p1664_p9 = pnand %p1663_p7, %p1879_p12 }
 0x190   : > { %p1669_p4 = por %p1668_p1, %p1667_p10 }
 0x191   : > { %p1665_p11 = pneg %p1664_p9 }
 0x193   : > { %p1670_p8 = pnand %p1669_p4, %p1665_p11 }
 0x195   : > { %1673 = shalt.err (!%p1670_p8)
}
 0x196   : > { %s1763_s11 = smov 128   ;;  %s1764_s12 = smov 8  }
 0x197   : > { %1431 = dma.vmem_to_hbm [thread:$0]  (%p1879_p12), %s2010_s27, 512, %s2008_s5, %s1047_s18, %s1763_s11, %s1763_s11, %s1764_s12  }
 0x198 PF: > { %s2097_s16 = sld [smem:[#allocation14_spill]]  ;;  %p1451_p3 = scmp.ge.s32.totalorder %s1752_s25, 2 }
 0x199   : > { %s2098_s29 = sld [smem:[#allocation17_spill]] }
 0x19e   : > { %s1077_s22 = sand.u32 1, %s2097_s16  }
 0x19f   : > { %p2099_p5 = scmp.ne.s32.totalorder %s2098_s29, 0  ;;  %s1078_s15 = scalar_lea.sflag [#allocation5], %s1077_s22 }
 0x1a1   : > { %p1445_p13 = pnand %p1451_p3, %p2099_p5 }
 0x1a3   : > { %p1446_p0 = pneg %p1445_p13 }
 0x1a5   : > { %1719 = dma.done.wait (%p1446_p0), %s1078_s15, 512  }
 0x1a6   : > { %1721 = vsyncadd (%p1446_p0), %s1078_s15, 4294966784  ;;  %s24_s25 = sadd.s32 1, %s1752_s25   ;;  %s2100_s17 = sld [smem:[#allocation20_spill]] }
 0x1a7   : > { %p21_p2 = scmp.ge.s32.totalorder %s24_s25, 8   ;;  %s2101_s21 = sld [smem:[#allocation15_spill]] }
 0x1a8   : > { %s2102_s22 = sld [smem:[#allocation16_spill]]  ;;  %s2105_s18 = smov %s1728_s19 }
 0x1a9   : > { %s2103_s23 = sld [smem:[#allocation18_spill]]  ;;  %s2106_s19 = smov %s1732_s20 }
 0x1aa   : > { %s2104_s24 = sld [smem:[#allocation19_spill]]  ;;  %23 = sbr.rel (!%p21_p2) target bundleno = 13 (0xd), region = 109 }
 0x1ac   : > { %s2107_s20 = smov %s2100_s17 }
 0x1af   :  { %1083 = vsyncpa [#allocation4], 1 }
 0x1b0   :  { %1085 = vsyncpa [#allocation4 + $0x1], 1 }
 0x1b1   :  { %1086 = vsyncpa [#allocation7], 1 }
 0x1b2   :  { %1088 = vsyncpa [#allocation7 + $0x1], 1 }
 0x1b3   :  { %1089 = vsyncpa [#allocation5], 1 }
 0x1b4   :  { %1091 = vsyncpa [#allocation5 + $0x1], 1 }

</bundles_post_ra>
